<compile_context>
chip_gen: v5e
topology: v5e:2x2
jax: 0.10.0
libtpu: 0.0.40
codegen_flags: <defaults>
</compile_context>

<pallas_src>
import math

import jax
import jax.numpy as jnp
from jax.experimental import pallas as pl
from jax.experimental.pallas import tpu as pltpu

# AWingLoss hyper-parameters (module __init__ defaults)
OMEGA = 14.0
THETA = 0.5
EPSILON = 1.0
ALPHA = 2.1
W_MAP = 10.0                      # `w` in generate_weight_map

_TARGET_BLOCK_BYTES = 1 << 20     # ~1 MiB per input block per buffer


def _make_awing_kernel(H, W):
    HW = H * W
    log_ratio = math.log(THETA / EPSILON)        # compile-time constant (log 0.5)

    def kernel(pred_ref, gt_ref, loss_ref):
        pred = pred_ref[...]                     # (TB, H*W) f32
        gt = gt_ref[...]                         # (TB, H*W) f32

        # ---------------- elementwise adaptive wing loss ----------------
        delta = jnp.abs(pred - gt)
        e = ALPHA - gt                           # assumes gt in [0,1] -> e > 0
        pow_e = jnp.exp(e * log_ratio)           # (theta/eps) ** e
        pow_em1 = pow_e * (EPSILON / THETA)      # (theta/eps) ** (e-1)  (no 2nd exp)
        A = OMEGA * (1.0 / (1.0 + pow_e)) * e * pow_em1 * (1.0 / EPSILON)
        C = THETA * A - OMEGA * jnp.log(1.0 + pow_e)
        # (delta/eps)**e via exp/log; delta==0 cleanly gives exp(-inf)=0 since e>0.
        pow_delta = jnp.exp(e * jnp.log(delta * (1.0 / EPSILON)))
        loss = jnp.where(delta < THETA,
                         OMEGA * jnp.log(1.0 + pow_delta),
                         A * delta - C)

        # -------- weight map: threshold first, then separable 3x3 dilate --------
        # max-pool commutes with the monotone (>= 0.2) threshold, so dilating the
        # 0/1 map with 0-padding is exactly equivalent to dilate-then-threshold.
        m = jnp.where(gt >= 0.2, 1.0, 0.0)

        flat = jax.lax.broadcasted_iota(jnp.int32, pred.shape, 1)   # flat index in plane
        col = jax.lax.rem(flat, W)
        not_first_col = col != 0
        not_last_col = col != (W - 1)
        not_first_row = flat >= W
        not_last_row = flat < (H - 1) * W

        # horizontal pass: neighbors (i, j-1) / (i, j+1) sit at flat offsets -1 / +1
        left = jnp.where(not_first_col, pltpu.roll(m, 1, axis=1), 0.0)
        right = jnp.where(not_last_col, pltpu.roll(m, HW - 1, axis=1), 0.0)
        hmax = jnp.maximum(m, jnp.maximum(left, right))
        # vertical pass: neighbors (i-1, j) / (i+1, j) sit at flat offsets -W / +W
        up = jnp.where(not_first_row, pltpu.roll(hmax, W, axis=1), 0.0)
        down = jnp.where(not_last_row, pltpu.roll(hmax, HW - W, axis=1), 0.0)
        dil = jnp.maximum(hmax, jnp.maximum(up, down))

        loss_ref[...] = loss * (W_MAP * dil + 1.0)

    return kernel


def _choose_tile(bn, row_bytes):
    """Rows (planes) per grid step: ~1 MiB blocks, multiple of 8, >=2 steps if possible."""
    tb = max(8, (_TARGET_BLOCK_BYTES // row_bytes) // 8 * 8)
    tb = min(tb, ((bn + 7) // 8) * 8)
    if bn > 8 and pl.cdiv(bn, tb) < 2:           # keep both v7x TensorCores busy
        tb = max(8, ((pl.cdiv(bn, 2) + 7) // 8) * 8)
    return tb


@jax.jit
def awing_loss(pred, gt):
    """pred, gt: (B, N, H, W) -> per-element AWing loss, same shape (float32)."""
    B, N, H, W = pred.shape
    BN, HW = B * N, H * W
    p = pred.reshape(BN, HW).astype(jnp.float32)
    g = gt.reshape(BN, HW).astype(jnp.float32)

    tb = _choose_tile(BN, HW * 4)
    bn_pad = pl.cdiv(BN, tb) * tb
    if bn_pad != BN:
        # zero-padded tail rows are computed but sliced off; all work is per-row.
        p = jnp.pad(p, ((0, bn_pad - BN), (0, 0)))
        g = jnp.pad(g, ((0, bn_pad - BN), (0, 0)))

    block_bytes = tb * HW * 4
    # generation-safe VMEM limit: covers 3 arrays x 2 buffers + temporaries,
    # stays well under v7x's 64 MiB physical VMEM.
    vmem_limit = int(min(48 << 20, max(32 << 20, 8 * block_bytes)))

    total = BN * HW
    cost = pl.CostEstimate(flops=40 * total,
                           transcendentals=5 * total,
                           bytes_accessed=12 * total)

    out = pl.pallas_call(
        _make_awing_kernel(H, W),
        out_shape=jax.ShapeDtypeStruct((bn_pad, HW), jnp.float32),
        grid=(bn_pad // tb,),
        in_specs=[
            pl.BlockSpec((tb, HW), lambda i: (i, 0)),
            pl.BlockSpec((tb, HW), lambda i: (i, 0)),
        ],
        out_specs=pl.BlockSpec((tb, HW), lambda i: (i, 0)),
        compiler_params=pltpu.CompilerParams(
            dimension_semantics=("parallel",),
            vmem_limit_bytes=vmem_limit),
        cost_estimate=cost,
    )(p, g)
    return out[:BN].reshape(B, N, H, W)


def awing_loss_ref(pred, gt):
    """Pure-JAX reference mirroring the PyTorch forward pass exactly."""
    delta = jnp.abs(pred - gt)
    ratio = THETA / EPSILON
    e = ALPHA - gt
    pow_e = jnp.power(ratio, e)
    A = OMEGA * (1.0 / (1.0 + pow_e)) * e * jnp.power(ratio, e - 1.0) * (1.0 / EPSILON)
    C = THETA * A - OMEGA * jnp.log(1.0 + pow_e)
    loss = jnp.where(delta < THETA,
                     OMEGA * jnp.log(1.0 + jnp.power(delta / EPSILON, e)),
                     A * delta - C)
    dilate = jax.lax.reduce_window(
        gt, -jnp.inf, jax.lax.max,
        window_dimensions=(1, 1, 3, 3),
        window_strides=(1, 1, 1, 1),
        padding=[(0, 0), (0, 0), (1, 1), (1, 1)])
    weight = jnp.where(dilate < 0.2, 0.0, 1.0)
    return loss * (W_MAP * weight + 1.0)


if __name__ == "__main__":
    key = jax.random.PRNGKey(0)
    k1, k2 = jax.random.split(key)
    B, N, H, W = 2, 4, 16, 16
    # groundtruth is a heatmap-like tensor in [0, 1]; prediction = gt + noise.
    # TODO(synk): the exp/log pow path assumes gt <= ALPHA (true for heatmaps in [0,1]).
    gt = jax.random.uniform(k1, (B, N, H, W), dtype=jnp.float32)
    pred = gt + 0.3 * jax.random.normal(k2, (B, N, H, W), dtype=jnp.float32)

    out = awing_loss(pred, gt)
    out = jax.block_until_ready(out)

    ref = awing_loss_ref(pred.astype(jnp.float32), gt.astype(jnp.float32))
    if not jnp.allclose(out, ref, rtol=1e-4, atol=1e-4):
        raise AssertionError(
            f"mismatch: max abs diff = {float(jnp.max(jnp.abs(out - ref)))}")
    print("KERNEL_OK")
</pallas_src>

<mosaic_0001>
module attributes {stable_mosaic.version = 11 : i64} {
  func.func @kernel(%arg0: i32, %arg1: memref<8x256xf32, #tpu.memory_space<vmem>>, %arg2: memref<8x256xf32, #tpu.memory_space<vmem>>, %arg3: memref<8x256xf32, #tpu.memory_space<vmem>>) attributes {dimension_semantics = [#tpu.dimension_semantics<parallel>], iteration_bounds = array<i64: 1>, scalar_prefetch = 0 : i64, scratch_operands = 0 : i64, tpu.core_type = #tpu.core_type<tc>, window_params = [{transform_indices = @transform_0, window_bounds = array<i64: 8, 256>}, {transform_indices = @transform_1, window_bounds = array<i64: 8, 256>}, {transform_indices = @transform_2, window_bounds = array<i64: 8, 256>}]} {
    %c0 = arith.constant 0 : index
    %c0_0 = arith.constant 0 : index
    %0 = vector.load %arg1[%c0, %c0_0] : memref<8x256xf32, #tpu.memory_space<vmem>>, vector<8x256xf32>
    %c0_1 = arith.constant 0 : index
    %c0_2 = arith.constant 0 : index
    %1 = vector.load %arg2[%c0_1, %c0_2] : memref<8x256xf32, #tpu.memory_space<vmem>>, vector<8x256xf32>
    %2 = arith.subf %0, %1 : vector<8x256xf32>
    %3 = math.absf %2 : vector<8x256xf32>
    %cst = arith.constant 2.100000e+00 : f32
    %4 = vector.broadcast %cst : f32 to vector<8x256xf32>
    %5 = arith.subf %4, %1 : vector<8x256xf32>
    %cst_3 = arith.constant -0.693147182 : f32
    %6 = vector.broadcast %cst_3 : f32 to vector<8x256xf32>
    %7 = arith.mulf %5, %6 : vector<8x256xf32>
    %8 = math.exp %7 : vector<8x256xf32>
    %cst_4 = arith.constant 2.000000e+00 : f32
    %9 = vector.broadcast %cst_4 : f32 to vector<8x256xf32>
    %10 = arith.mulf %8, %9 : vector<8x256xf32>
    %cst_5 = arith.constant 1.000000e+00 : f32
    %11 = vector.broadcast %cst_5 : f32 to vector<8x256xf32>
    %12 = arith.addf %11, %8 : vector<8x256xf32>
    %cst_6 = arith.constant 1.000000e+00 : f32
    %13 = vector.broadcast %cst_6 : f32 to vector<8x256xf32>
    %14 = arith.divf %13, %12 : vector<8x256xf32>
    %cst_7 = arith.constant 1.400000e+01 : f32
    %15 = vector.broadcast %cst_7 : f32 to vector<8x256xf32>
    %16 = arith.mulf %15, %14 : vector<8x256xf32>
    %17 = arith.mulf %16, %5 : vector<8x256xf32>
    %18 = arith.mulf %17, %10 : vector<8x256xf32>
    %cst_8 = arith.constant 1.000000e+00 : f32
    %19 = vector.broadcast %cst_8 : f32 to vector<8x256xf32>
    %20 = arith.mulf %18, %19 : vector<8x256xf32>
    %cst_9 = arith.constant 5.000000e-01 : f32
    %21 = vector.broadcast %cst_9 : f32 to vector<8x256xf32>
    %22 = arith.mulf %21, %20 : vector<8x256xf32>
    %cst_10 = arith.constant 1.000000e+00 : f32
    %23 = vector.broadcast %cst_10 : f32 to vector<8x256xf32>
    %24 = arith.addf %23, %8 : vector<8x256xf32>
    %25 = math.log %24 : vector<8x256xf32>
    %cst_11 = arith.constant 1.400000e+01 : f32
    %26 = vector.broadcast %cst_11 : f32 to vector<8x256xf32>
    %27 = arith.mulf %26, %25 : vector<8x256xf32>
    %28 = arith.subf %22, %27 : vector<8x256xf32>
    %cst_12 = arith.constant 1.000000e+00 : f32
    %29 = vector.broadcast %cst_12 : f32 to vector<8x256xf32>
    %30 = arith.mulf %3, %29 : vector<8x256xf32>
    %31 = math.log %30 : vector<8x256xf32>
    %32 = arith.mulf %5, %31 : vector<8x256xf32>
    %33 = math.exp %32 : vector<8x256xf32>
    %cst_13 = arith.constant 5.000000e-01 : f32
    %34 = vector.broadcast %cst_13 : f32 to vector<8x256xf32>
    %35 = arith.cmpf olt, %3, %34 : vector<8x256xf32>
    %cst_14 = arith.constant 1.000000e+00 : f32
    %36 = vector.broadcast %cst_14 : f32 to vector<8x256xf32>
    %37 = arith.addf %36, %33 : vector<8x256xf32>
    %38 = math.log %37 : vector<8x256xf32>
    %cst_15 = arith.constant 1.400000e+01 : f32
    %39 = vector.broadcast %cst_15 : f32 to vector<8x256xf32>
    %40 = arith.mulf %39, %38 : vector<8x256xf32>
    %41 = arith.mulf %20, %3 : vector<8x256xf32>
    %42 = arith.subf %41, %28 : vector<8x256xf32>
    %43 = arith.select %35, %40, %42 : vector<8x256xi1>, vector<8x256xf32>
    %cst_16 = arith.constant 2.000000e-01 : f32
    %44 = vector.broadcast %cst_16 : f32 to vector<8x256xf32>
    %45 = arith.cmpf oge, %1, %44 : vector<8x256xf32>
    %cst_17 = arith.constant 1.000000e+00 : f32
    %cst_18 = arith.constant 0.000000e+00 : f32
    %46 = vector.broadcast %cst_17 : f32 to vector<8x256xf32>
    %47 = vector.broadcast %cst_18 : f32 to vector<8x256xf32>
    %48 = arith.select %45, %46, %47 : vector<8x256xi1>, vector<8x256xf32>
    %49 = tpu.iota {dimensions = array<i32: 1>} : vector<8x256xi32>
    %c16_i32 = arith.constant 16 : i32
    %50 = vector.broadcast %c16_i32 : i32 to vector<8x256xi32>
    %51 = arith.remsi %49, %50 : vector<8x256xi32>
    %c0_i32 = arith.constant 0 : i32
    %52 = vector.broadcast %c0_i32 : i32 to vector<8x256xi32>
    %53 = arith.cmpi ne, %51, %52 : vector<8x256xi32>
    %c15_i32 = arith.constant 15 : i32
    %54 = vector.broadcast %c15_i32 : i32 to vector<8x256xi32>
    %55 = arith.cmpi ne, %51, %54 : vector<8x256xi32>
    %c16_i32_19 = arith.constant 16 : i32
    %56 = vector.broadcast %c16_i32_19 : i32 to vector<8x256xi32>
    %57 = arith.cmpi sge, %49, %56 : vector<8x256xi32>
    %c240_i32 = arith.constant 240 : i32
    %58 = vector.broadcast %c240_i32 : i32 to vector<8x256xi32>
    %59 = arith.cmpi slt, %49, %58 : vector<8x256xi32>
    %c1_i32 = arith.constant 1 : i32
    %60 = tpu.dynamic_rotate %48 by %c1_i32 dim 1 : vector<8x256xf32>, i32 -> vector<8x256xf32>
    %cst_20 = arith.constant 0.000000e+00 : f32
    %61 = vector.broadcast %cst_20 : f32 to vector<8x256xf32>
    %62 = arith.select %53, %60, %61 : vector<8x256xi1>, vector<8x256xf32>
    %c255_i32 = arith.constant 255 : i32
    %63 = tpu.dynamic_rotate %48 by %c255_i32 dim 1 : vector<8x256xf32>, i32 -> vector<8x256xf32>
    %cst_21 = arith.constant 0.000000e+00 : f32
    %64 = vector.broadcast %cst_21 : f32 to vector<8x256xf32>
    %65 = arith.select %55, %63, %64 : vector<8x256xi1>, vector<8x256xf32>
    %66 = arith.maximumf %62, %65 : vector<8x256xf32>
    %67 = arith.maximumf %48, %66 : vector<8x256xf32>
    %c16_i32_22 = arith.constant 16 : i32
    %68 = tpu.dynamic_rotate %67 by %c16_i32_22 dim 1 : vector<8x256xf32>, i32 -> vector<8x256xf32>
    %cst_23 = arith.constant 0.000000e+00 : f32
    %69 = vector.broadcast %cst_23 : f32 to vector<8x256xf32>
    %70 = arith.select %57, %68, %69 : vector<8x256xi1>, vector<8x256xf32>
    %c240_i32_24 = arith.constant 240 : i32
    %71 = tpu.dynamic_rotate %67 by %c240_i32_24 dim 1 : vector<8x256xf32>, i32 -> vector<8x256xf32>
    %cst_25 = arith.constant 0.000000e+00 : f32
    %72 = vector.broadcast %cst_25 : f32 to vector<8x256xf32>
    %73 = arith.select %59, %71, %72 : vector<8x256xi1>, vector<8x256xf32>
    %74 = arith.maximumf %70, %73 : vector<8x256xf32>
    %75 = arith.maximumf %67, %74 : vector<8x256xf32>
    %cst_26 = arith.constant 1.000000e+01 : f32
    %76 = vector.broadcast %cst_26 : f32 to vector<8x256xf32>
    %77 = arith.mulf %76, %75 : vector<8x256xf32>
    %cst_27 = arith.constant 1.000000e+00 : f32
    %78 = vector.broadcast %cst_27 : f32 to vector<8x256xf32>
    %79 = arith.addf %77, %78 : vector<8x256xf32>
    %80 = arith.mulf %43, %79 : vector<8x256xf32>
    %c0_28 = arith.constant 0 : index
    %c0_29 = arith.constant 0 : index
    %81 = vector.load %arg3[%c0_28, %c0_29] : memref<8x256xf32, #tpu.memory_space<vmem>>, vector<8x256xf32>
    tpu.vector_store %arg3[%c0_28, %c0_29], %80 {strides = array<i32>} : memref<8x256xf32, #tpu.memory_space<vmem>>, vector<8x256xf32>,
    return
  }
  func.func @transform_0(%arg0: i32) -> (i32, i32) {
    %c0_i32 = arith.constant 0 : i32
    %c0_i32_0 = arith.constant 0 : i32
    return %arg0, %c0_i32 : i32, i32
  }
  func.func @transform_1(%arg0: i32) -> (i32, i32) {
    %c0_i32 = arith.constant 0 : i32
    %c0_i32_0 = arith.constant 0 : i32
    return %arg0, %c0_i32 : i32, i32
  }
  func.func @transform_2(%arg0: i32) -> (i32, i32) {
    %c0_i32 = arith.constant 0 : i32
    %c0_i32_0 = arith.constant 0 : i32
    return %arg0, %c0_i32 : i32, i32
  }
}

</mosaic_0001>

<bundles_post_ra>
// kernel: awing_loss.1
= control target key start
LH: loop header
LB: loop body
LE: loop exit
PB: predicated region body
PF: predicated region fallthrough
CT: control target
= control target key end

     0   :  { %v237_v2 = vmov 0.0   ;;  %s238_s13 = smov 1   ;;  %s239_s14 = smov 127   ;;  %v107_v6 = vlaneseq  ;;  %s342_s1 = inlined_call_operand.vmem [shape: f32[8,256], index: 1, kind: input, shape index: {}]   ;;  %s343_s0 = inlined_call_operand.vmem [shape: f32[8,256], index: 0, kind: input, shape index: {}]   ;;  %s344_s2 = inlined_call_operand.vmem [shape: f32[8,256], index: 2, kind: output, shape index: {}]  }
   0x1   :  { %v260_v0 = vld [vmem:[%s342_s1] sm:$0xff]  ;;  %v265_v1 = vld [vmem:[%s342_s1 + $0x8] sm:$0xff]  ;;  %s240_s1 = smov 16   ;;  %s241_s15 = smov 112  }
   0x2   :  { %vm103_vm0 = vcmp.ge.f32.partialorder %v260_v0, 0.2  ;;  %vm104_vm1 = vcmp.ge.f32.partialorder %v265_v1, 0.2  ;;  %v269_v7 = vand.u32 127, %v107_v6  ;;  %v11_v39 = vld [vmem:[%s343_s0] sm:$0xff] }
   0x3   :  { %v105_v3 = vsel %vm103_vm0, 1.0, %v237_v2  ;;  %v106_v4 = vsel %vm104_vm1, 1.0, %v237_v2  ;;  %v297_v32 = vsub.f32 2.1, %v260_v0  ;;  %v300_v33 = vsub.f32 2.1, %v265_v1 }
   0x4   :  { %v193_v5 = vpack.i.bf16 %v106_v4, %v105_v3  ;;  %v272_v8 = vadd.s32 128, %v269_v7  ;;  %v114_v10 = vand.u32 15, %v269_v7  ;;  %vm136_vm2 = vcmp.lt.s32.totalorder %v269_v7, 1  ;;  %v12_v41 = vld [vmem:[%s343_s0 + $0x8] sm:$0xff] }
   0x5   :  { %vm145_vm7 = vcmp.lt.s32.totalorder %v269_v7, 127  ;;  %v21_v34 = vmul.f32 -0.6931472, %v297_v32  ;;  %v22_v35 = vmul.f32 -0.6931472, %v300_v33  ;;  %v15_v43 = vsub.f32 %v11_v39, %v260_v0 }
   0x6   :  { %194 = vrot.lane.b32.xlu0 %v193_v5, %s238_s13  ;;  %v121_v11 = vand.u32 15, %v272_v8  ;;  %vm277_vm3 = vcmp.ne.s32.totalorder %v114_v10, 0  ;;  %vm126_vm5 = vcmp.ne.s32.totalorder %v114_v10, 15  ;;  %v16_v45 = vsub.f32 %v12_v41, %v265_v1 }
   0x7   :  { %v23_v36 = vmul.f32 1.442695, %v21_v34  ;;  %v25_v37 = vmul.f32 1.442695, %v22_v35  ;;  %v312_v46 = vand.u32 2147483647, %v15_v43 }
   0x8   :  { %vm281_vm4 = vcmp.ne.s32.totalorder %v121_v11, 0  ;;  %vm127_vm6 = vcmp.ne.s32.totalorder %v121_v11, 15  ;;  %v314_v47 = vand.u32 2147483647, %v16_v45  ;;  %vm158_vm0 = vcmp.lt.s32.totalorder %v269_v7, 16 }
   0x9   :  { %213 = vpow2.f32 %v23_v36  ;;  %vm128_vm1 = vcmp.ge.s32.totalorder %v269_v7, 16 }
   0xa   :  { %215 = vpow2.f32 %v25_v37 }
   0xe   :  { %199 = vrot.lane.b32.xlu0 %v193_v5, %s239_s14 }
   0xf   :  { %v214_v38 = vpop.eup %213 }
  0x10   :  { %v216_v40 = vpop.eup %215  ;;  %v29_v42 = vadd.f32 1.0, %v214_v38 }
  0x11   :  { %v30_v44 = vadd.f32 1.0, %v216_v40 }
  0x12   :  { %217 = vrcp.f32 %v29_v42  ;;  %vm36_vm8 = vweird.f32 %v29_v42  ;;  %v42_v62 = vand.u32 2147483648, %v29_v42  ;;  %v40_v0 = vand.u32 2147483647, %v29_v42 }
  0x13   :  { %219 = vrcp.f32 %v30_v44  ;;  %vm51_vm10 = vweird.f32 %v30_v44  ;;  %v57_v1 = vand.u32 2147483648, %v30_v44 }
  0x14   :  { %221 = vlog2.f32 %v312_v46  ;;  %v43_v6 = vor.u32 1.1754944e-38, %v42_v62  ;;  %vm41_vm14 = vcmp.eq.f32.partialorder %v40_v0, 8.507059e+37 }
  0x15   :  { %223 = vlog2.f32 %v314_v47  ;;  %v58_v10 = vor.u32 1.1754944e-38, %v57_v1 }
  0x18   :  { %v218_v48 = vpop.eup %217 }
  0x19   :  { %v220_v49 = vpop.eup %219  ;;  %v32_v50 = vmul.f32 %v218_v48, %v29_v42  ;;  %vm37_vm9 = vweird.f32 %v218_v48 }
  0x1a   :  { %v222_v51 = vpop.eup %221  ;;  %v47_v52 = vmul.f32 %v220_v49, %v30_v44  ;;  %vm52_vm11 = vweird.f32 %v220_v49  ;;  %vm38_vm12 = vmor %vm36_vm8, %vm37_vm9 }
  0x1b   :  { %v224_v53 = vpop.eup %223  ;;  %v33_v54 = vsub.f32 1.0, %v32_v50  ;;  %v78_v55 = vmul.f32 0.6931472, %v222_v51  ;;  %vm53_vm13 = vmor %vm51_vm10, %vm52_vm11 }
  0x1c   :  { %v48_v56 = vsub.f32 1.0, %v47_v52  ;;  %v80_v57 = vmul.f32 0.6931472, %v224_v53 }
  0x1d   :  { %v34_v58 = vmul.f32 %v218_v48, %v33_v54  ;;  %v81_v59 = vmul.f32 %v78_v55, %v297_v32 }
  0x1e   :  { %v49_v60 = vmul.f32 %v220_v49, %v48_v56  ;;  %v82_v61 = vmul.f32 %v80_v57, %v300_v33 }
  0x1f   :  { %v35_v63 = vadd.f32 %v218_v48, %v34_v58  ;;  %v83_v2 = vmul.f32 1.442695, %v81_v59 }
  0x20   :  { %v85_v5 = vmul.f32 1.442695, %v82_v61 }
  0x21   :  { %225 = vpow2.f32 %v83_v2 }
  0x22   :  { %227 = vpow2.f32 %v85_v5 }
  0x23   :  { %229 = vlog2.f32 %v29_v42 }
  0x24   :  { %231 = vlog2.f32 %v30_v44 }
  0x27   :  { %v226_v15 = vpop.eup %225 }
  0x78   :  { %v195_v9 = vpop.permute.xlu0 %194 }
  0x79   :  { %v197_v12 = vunpack.i.h.bf16 %v195_v9  ;;  %v196_v13 = vunpack.i.l.bf16 %v195_v9  ;;  %v39_v9 = vsel %vm38_vm12, %v218_v48, %v35_v63 }
  0x7b   :  { %v137_v17 = vsel %vm136_vm2, %v196_v13, %v197_v12  ;;  %v138_v18 = vsel %vm136_vm2, %v197_v12, %v196_v13  ;;  %v44_v12 = vsel %vm41_vm14, %v43_v6, %v39_v9  ;;  %vm167_vm2 = vcmp.lt.s32.totalorder %v269_v7, 112 }
  0x7c   :  { %v139_v23 = vsel %vm277_vm3, %v138_v18, 0.0  ;;  %v140_v24 = vsel %vm281_vm4, %v137_v17, 0.0  ;;  %v61_v14 = vmul.f32 14.0, %v44_v12  ;;  %v27_v18 = vmul.f32 2.0, %v214_v38 }
  0x7d   :  { %vm131_vm3 = vcmp.lt.s32.totalorder %v272_v8, 240  ;;  %vm87_vm4 = vcmp.lt.f32.partialorder %v312_v46, 0.5 }
  0x80   :  { %v200_v16 = vpop.permute.xlu0 %199 }
  0x81   :  { %v202_v19 = vunpack.i.h.bf16 %v200_v16  ;;  %v201_v20 = vunpack.i.l.bf16 %v200_v16  ;;  %v228_v16 = vpop.eup %227 }
  0x83   :  { %v146_v21 = vsel %vm145_vm7, %v201_v20, %v202_v19  ;;  %v147_v22 = vsel %vm145_vm7, %v202_v19, %v201_v20  ;;  %v63_v19 = vmul.f32 %v61_v14, %v297_v32  ;;  %v89_v20 = vadd.f32 1.0, %v226_v15 }
  0x84   :  { %v148_v25 = vsel %vm126_vm5, %v146_v21, 0.0  ;;  %v149_v26 = vsel %vm127_vm6, %v147_v22, 0.0  ;;  %v230_v21 = vpop.eup %229  ;;  %v90_v22 = vadd.f32 1.0, %v228_v16  ;;  %vm88_vm5 = vcmp.lt.f32.partialorder %v314_v47, 0.5 }
  0x85   :  { %v150_v27 = vmax.f32 %v139_v23, %v148_v25  ;;  %v151_v28 = vmax.f32 %v140_v24, %v149_v26  ;;  %v28_v23 = vmul.f32 2.0, %v216_v40  ;;  %v232_v25 = vpop.eup %231  ;;  %v65_v26 = vmul.f32 %v63_v19, %v27_v18 }
  0x86   :  { %233 = vlog2.f32 %v89_v20  ;;  %v72_v34 = vmul.f32 0.6931472, %v232_v25 }
  0x87   :  { %v290_v29 = vmax.f32 %v105_v3, %v150_v27  ;;  %v292_v30 = vmax.f32 %v106_v4, %v151_v28  ;;  %v50_v3 = vadd.f32 %v220_v49, %v49_v60  ;;  %v55_v4 = vand.u32 2147483647, %v30_v44 }
  0x88   :  { %v70_v27 = vmul.f32 0.6931472, %v230_v21  ;;  %235 = vlog2.f32 %v90_v22  ;;  %v67_v35 = vmul.f32 0.5, %v65_v26  ;;  %v74_v41 = vmul.f32 14.0, %v72_v34 }
  0x89   :  { %v203_v31 = vpack.i.bf16 %v292_v30, %v290_v29  ;;  %v54_v11 = vsel %vm53_vm13, %v220_v49, %v50_v3  ;;  %vm56_vm15 = vcmp.eq.f32.partialorder %v55_v4, 8.507059e+37 }
  0x8a   :  { %v59_v13 = vsel %vm56_vm15, %v58_v10, %v54_v11  ;;  %v73_v36 = vmul.f32 14.0, %v70_v27 }
  0x8b   :  { %204 = vrot.lane.b32.xlu1 %v203_v31, %s240_s1  ;;  %v62_v17 = vmul.f32 14.0, %v59_v13 }
  0x8c   :  { %v234_v32 = vpop.eup %233  ;;  %v75_v42 = vsub.f32 %v67_v35, %v73_v36 }
  0x8d   :  { %v64_v24 = vmul.f32 %v62_v17, %v300_v33  ;;  %v97_v33 = vmul.f32 %v65_v26, %v312_v46  ;;  %v92_v49 = vmul.f32 0.6931472, %v234_v32 }
  0x8e   :  { %v236_v40 = vpop.eup %235 }
  0x8f   :  { %v94_v52 = vmul.f32 0.6931472, %v236_v40  ;;  %v99_v59 = vsub.f32 %v97_v33, %v75_v42  ;;  %v95_v60 = vmul.f32 14.0, %v92_v49 }
  0x91   :  { %v96_v8 = vmul.f32 14.0, %v94_v52  ;;  %v101_v2 = vsel %vm87_vm4, %v95_v60, %v99_v59 }
  0x93   :  { %209 = vrot.lane.b32.xlu1 %v203_v31, %s241_s15  ;;  %v66_v31 = vmul.f32 %v64_v24, %v28_v23 }
  0x95   :  { %v68_v39 = vmul.f32 0.5, %v66_v31  ;;  %v98_v51 = vmul.f32 %v66_v31, %v314_v47 }
  0x97   :  { %v76_v50 = vsub.f32 %v68_v39, %v74_v41 }
  0x99   :  { %v100_v62 = vsub.f32 %v98_v51, %v76_v50 }
  0x9b   :  { %v102_v7 = vsel %vm88_vm5, %v96_v8, %v100_v62 }
  0xfd   :  { %v205_v28 = vpop.permute.xlu1 %204 }
  0xfe   :  { %v207_v37 = vunpack.i.h.bf16 %v205_v28  ;;  %v206_v38 = vunpack.i.l.bf16 %v205_v28 }
 0x100   :  { %v160_v43 = vsel %vm158_vm0, %v207_v37, %v206_v38  ;;  %v159_v56 = vsel %vm158_vm0, %v206_v38, %v207_v37 }
 0x101   :  { %v161_v53 = vsel %vm128_vm1, %v160_v43, 0.0 }
 0x105   :  { %v210_v44 = vpop.permute.xlu1 %209 }
 0x106   :  { %v212_v45 = vunpack.i.h.bf16 %v210_v44  ;;  %v211_v48 = vunpack.i.l.bf16 %v210_v44 }
 0x108   :  { %v168_v54 = vsel %vm167_vm2, %v211_v48, %v212_v45  ;;  %v169_v55 = vsel %vm167_vm2, %v212_v45, %v211_v48 }
 0x109   :  { %v171_v57 = vsel %vm131_vm3, %v169_v55, 0.0  ;;  %v172_v58 = vmax.f32 %v161_v53, %v168_v54 }
 0x10a   :  { %v173_v61 = vmax.f32 %v159_v56, %v171_v57 }
 0x10b   :  { %v174_v63 = vmax.f32 %v290_v29, %v172_v58 }
 0x10c   :  { %v175_v0 = vmax.f32 %v292_v30, %v173_v61 }
 0x10d   :  { %v176_v1 = vmul.f32 10.0, %v174_v63 }
 0x10e   :  { %v177_v3 = vmul.f32 10.0, %v175_v0 }
 0x10f   :  { %v178_v4 = vadd.f32 1.0, %v176_v1 }
 0x110   :  { %v179_v5 = vadd.f32 1.0, %v177_v3 }
 0x111   :  { %v180_v6 = vmul.f32 %v178_v4, %v101_v2 }
 0x112   :  { %v181_v9 = vmul.f32 %v179_v5, %v102_v7 }
 0x113   :  { %182 = vst [vmem:[%s344_s2] sm:$0xff] %v180_v6 }
 0x114   :  { %183 = vst [vmem:[%s344_s2 + $0x8] sm:$0xff] %v181_v9 }

</bundles_post_ra>
